<compile_context>
chip_gen: v5e
topology: v5e:2x2
jax: 0.10.0
libtpu: 0.0.40
codegen_flags: <defaults>
</compile_context>

<pallas_src>
import functools

import jax
import jax.numpy as jnp
from jax.experimental import pallas as pl
from jax.experimental.pallas import tpu as pltpu


_LANE_COLS = 512  # lane-dense slab width (multiple of 128 lanes)


def _round_up(v, m):
    return (v + m - 1) // m * m


def _int_pow(x, n):
    """x**n for a small static non-negative int n (square-and-multiply)."""
    if n == 0:
        return jnp.ones_like(x)
    result = None
    base = x
    while n:
        if n & 1:
            result = base if result is None else result * base
        n >>= 1
        if n:
            base = base * base
    return result


def _envelope_kernel(x_ref, o_ref, *, p, a, b, c):
    x = x_ref[...].astype(jnp.float32)
    # Mirror the reference computation exactly (keeps results within ~1 ulp).
    x_p_0 = _int_pow(x, p - 1)
    x_p_1 = x_p_0 * x
    x_p_2 = x_p_1 * x
    env = 1.0 / x + a * x_p_0 + b * x_p_1 + c * x_p_2
    o_ref[...] = env.astype(o_ref.dtype)


def envelope(x, exponent, *, target_block_bytes=4 * 1024 * 1024):
    """Apply the envelope function elementwise.  Accepts any-rank input."""
    p = exponent + 1
    a = -(p + 1) * (p + 2) / 2.0
    b = float(p * (p + 2))
    c = -p * (p + 1) / 2.0

    orig_shape = x.shape
    dtype = x.dtype
    itemsize = jnp.dtype(dtype).itemsize

    # Flatten completely -> lane-dense (rows, _LANE_COLS) slab.
    flat = x.reshape(-1)
    n = flat.shape[0]

    cols = _LANE_COLS
    row_bytes = cols * itemsize
    rows_needed = -(-n // cols)
    rows_p8 = _round_up(max(rows_needed, 1), 8)

    # Rows per block: multiple of 8 sublanes, ~target_block_bytes per tile.
    max_block_rows = max(8, (target_block_bytes // row_bytes) // 8 * 8)
    if rows_p8 <= max_block_rows:
        if rows_p8 >= 16:
            # Split into >=2 grid steps so both v7x TensorCores get work.
            block_rows = _round_up(-(-rows_p8 // 2), 8)
        else:
            block_rows = rows_p8
    else:
        block_rows = max_block_rows

    # Pad rows to an exact multiple of block_rows: no masked tail stores.
    rows_total = _round_up(rows_p8, block_rows)
    padded_n = rows_total * cols

    # Pad with 1.0 so padded lanes never hit 1/0 (masked anyway, but cleaner).
    if padded_n != n:
        flat = jnp.pad(flat, (0, padded_n - n), constant_values=1)
    x2 = flat.reshape(rows_total, cols)

    grid = (rows_total // block_rows,)
    tile_bytes = block_rows * cols * itemsize
    # in + out, double buffered, plus headroom; capped well below v7x's 64 MiB.
    vmem_limit = int(min(48 * 1024 * 1024, 4 * tile_bytes + 4 * 1024 * 1024))

    kernel = functools.partial(_envelope_kernel, p=p, a=a, b=b, c=c)

    cost = pl.CostEstimate(
        flops=10 * padded_n,
        transcendentals=0,
        bytes_accessed=2 * padded_n * itemsize,
    )

    out2 = pl.pallas_call(
        kernel,
        out_shape=jax.ShapeDtypeStruct((rows_total, cols), dtype),
        grid=grid,
        in_specs=[pl.BlockSpec((block_rows, cols), lambda i: (i, 0))],
        out_specs=pl.BlockSpec((block_rows, cols), lambda i: (i, 0)),
        compiler_params=pltpu.CompilerParams(
            dimension_semantics=("parallel",),
            vmem_limit_bytes=vmem_limit,
        ),
        cost_estimate=cost,
    )(x2)

    return out2.reshape(-1)[:n].reshape(orig_shape)


def envelope_ref(x, exponent):
    """Pure-JAX reference matching the PyTorch forward."""
    p = exponent + 1
    a = -(p + 1) * (p + 2) / 2.0
    b = float(p * (p + 2))
    c = -p * (p + 1) / 2.0
    xf = x.astype(jnp.float32)
    x_p_0 = xf ** (p - 1)
    x_p_1 = x_p_0 * xf
    x_p_2 = x_p_1 * xf
    return (1.0 / xf + a * x_p_0 + b * x_p_1 + c * x_p_2).astype(x.dtype)


if __name__ == "__main__":
    exponent = 5  # typical DimeNet setting -> p = 6

    key = jax.random.PRNGKey(0)
    k1, k2, k3 = jax.random.split(key, 3)

    # Envelope is applied to scaled distances in (0, 1]; keep inputs away
    # from 0 to avoid huge 1/x values.
    tests = [
        jax.random.uniform(k1, (4096,), jnp.float32, 0.05, 1.0),    # (E,) distances
        jax.random.uniform(k2, (300, 7), jnp.float32, 0.05, 1.0),   # odd shape / padding path
        jax.random.uniform(k3, (50000,), jnp.float32, 0.05, 1.0),   # multi-step grid path
    ]

    for x in tests:
        out = jax.block_until_ready(envelope(x, exponent))
        ref = envelope_ref(x, exponent)
        assert out.shape == ref.shape and out.dtype == ref.dtype
        assert jnp.allclose(out, ref, rtol=1e-5, atol=1e-5), (
            float(jnp.max(jnp.abs(out - ref)))
        )

    print("KERNEL_OK")
</pallas_src>

<mosaic_0001>
module attributes {stable_mosaic.version = 11 : i64} {
  func.func @_envelope_kernel(%arg0: i32, %arg1: memref<8x512xf32, #tpu.memory_space<vmem>>, %arg2: memref<8x512xf32, #tpu.memory_space<vmem>>) attributes {dimension_semantics = [#tpu.dimension_semantics<parallel>], iteration_bounds = array<i64: 1>, scalar_prefetch = 0 : i64, scratch_operands = 0 : i64, tpu.core_type = #tpu.core_type<tc>, window_params = [{transform_indices = @transform_0, window_bounds = array<i64: 8, 512>}, {transform_indices = @transform_1, window_bounds = array<i64: 8, 512>}]} {
    %c0 = arith.constant 0 : index
    %c0_0 = arith.constant 0 : index
    %0 = vector.load %arg1[%c0, %c0_0] : memref<8x512xf32, #tpu.memory_space<vmem>>, vector<8x512xf32>
    %1 = arith.mulf %0, %0 : vector<8x512xf32>
    %2 = arith.mulf %1, %1 : vector<8x512xf32>
    %3 = arith.mulf %0, %2 : vector<8x512xf32>
    %4 = arith.mulf %3, %0 : vector<8x512xf32>
    %5 = arith.mulf %4, %0 : vector<8x512xf32>
    %cst = arith.constant 1.000000e+00 : f32
    %6 = vector.broadcast %cst : f32 to vector<8x512xf32>
    %7 = arith.divf %6, %0 : vector<8x512xf32>
    %cst_1 = arith.constant -2.800000e+01 : f32
    %8 = vector.broadcast %cst_1 : f32 to vector<8x512xf32>
    %9 = arith.mulf %8, %3 : vector<8x512xf32>
    %10 = arith.addf %7, %9 : vector<8x512xf32>
    %cst_2 = arith.constant 4.800000e+01 : f32
    %11 = vector.broadcast %cst_2 : f32 to vector<8x512xf32>
    %12 = arith.mulf %11, %4 : vector<8x512xf32>
    %13 = arith.addf %10, %12 : vector<8x512xf32>
    %cst_3 = arith.constant -2.100000e+01 : f32
    %14 = vector.broadcast %cst_3 : f32 to vector<8x512xf32>
    %15 = arith.mulf %14, %5 : vector<8x512xf32>
    %16 = arith.addf %13, %15 : vector<8x512xf32>
    %c0_4 = arith.constant 0 : index
    %c0_5 = arith.constant 0 : index
    %17 = vector.load %arg2[%c0_4, %c0_5] : memref<8x512xf32, #tpu.memory_space<vmem>>, vector<8x512xf32>
    tpu.vector_store %arg2[%c0_4, %c0_5], %16 {strides = array<i32>} : memref<8x512xf32, #tpu.memory_space<vmem>>, vector<8x512xf32>,
    return
  }
  func.func @transform_0(%arg0: i32) -> (i32, i32) {
    %c0_i32 = arith.constant 0 : i32
    %c0_i32_0 = arith.constant 0 : i32
    return %arg0, %c0_i32 : i32, i32
  }
  func.func @transform_1(%arg0: i32) -> (i32, i32) {
    %c0_i32 = arith.constant 0 : i32
    %c0_i32_0 = arith.constant 0 : i32
    return %arg0, %c0_i32 : i32, i32
  }
}

</mosaic_0001>

<bundles_post_ra>
// kernel: tpu_custom_call.1
= control target key start
LH: loop header
LB: loop body
LE: loop exit
PB: predicated region body
PF: predicated region fallthrough
CT: control target
= control target key end

     0   :  { %6 = vsyncpa [#allocation3], 0  ;;  %s302_s0 = inlined_call_operand.hbm [shape: f32[8,512], index: 0, kind: input, shape index: {}]   ;;  %s303_s1 = inlined_call_operand.hbm [shape: f32[8,512], index: 1, kind: output, shape index: {}]  }
   0x1   :  { %7 = vsyncpa [#allocation4], 0  ;;  %s13_s8 = sshll.u32 %s302_s0, 4  ;;  %s214_s9 = smov [#allocation2]   ;;  %s14_s8 = int_to_ptr.hbm [resolvable:$true] %s13_s8 }
   0x2   :  { %s15_s10 = sshll.u32 %s214_s9, 4  ;;  %s16_s10 = int_to_ptr.vmem [resolvable:$true] %s15_s10 }
   0x3   :  { %18 = dma.hbm_to_vmem [thread:$0]  %s14_s8, 512, %s16_s10, [#allocation3]  }
   0x4   :  { %210 = dma.done.wait [#allocation3], 512  }
   0x5   :  { %211 = vsyncadd [#allocation3], 4294966784  ;;  %v23_v0 = vld [vmem:[#allocation2] sm:$0xff]  ;;  %v24_v1 = vld [vmem:[#allocation2 + $0x8] sm:$0xff]  ;;  %s215_s0 = smov [#allocation5]   ;;  %s142_s14 = sshll.u32 %s303_s1, 4  ;;  %s143_s14 = int_to_ptr.hbm [resolvable:$true] %s142_s14 }
   0x6   :  { %v27_v2 = vmul.f32 %v23_v0, %v23_v0  ;;  %154 = vrcp.f32 %v23_v0  ;;  %v229_v3 = vld [vmem:[#allocation2 + $0x10] sm:$0xff]  ;;  %v56_v4 = vand.u32 2147483647, %v23_v0  ;;  %v58_v5 = vand.u32 2147483648, %v23_v0  ;;  %v234_v12 = vld [vmem:[#allocation2 + $0x18] sm:$0xff]  ;;  %s140_s11 = sshll.u32 %s215_s0, 4  ;;  %s141_s11 = int_to_ptr.vmem [resolvable:$true] %s140_s11 }
   0x7   :  { %v28_v6 = vmul.f32 %v24_v1, %v24_v1  ;;  %156 = vrcp.f32 %v24_v1  ;;  %vm52_vm0 = vweird.f32 %v23_v0  ;;  %v71_v8 = vand.u32 2147483647, %v24_v1 }
   0x8   :  { %v31_v7 = vmul.f32 %v27_v2, %v27_v2  ;;  %v73_v9 = vand.u32 2147483648, %v24_v1  ;;  %vm67_vm1 = vweird.f32 %v24_v1  ;;  %v29_v11 = vmul.f32 %v229_v3, %v229_v3 }
   0x9   :  { %v32_v10 = vmul.f32 %v28_v6, %v28_v6  ;;  %158 = vrcp.f32 %v229_v3  ;;  %v59_v14 = vor.u32 1.1754944e-38, %v58_v5  ;;  %vm82_vm2 = vweird.f32 %v229_v3 }
   0xa   :  { %v35_v13 = vmul.f32 %v31_v7, %v23_v0  ;;  %v74_v15 = vor.u32 1.1754944e-38, %v73_v9  ;;  %vm237_vm3 = vcmp.eq.f32.partialorder %v56_v4, 8.507059e+37  ;;  %v33_v18 = vmul.f32 %v29_v11, %v29_v11 }
   0xb   :  { %v36_v17 = vmul.f32 %v32_v10, %v24_v1  ;;  %v86_v19 = vand.u32 2147483647, %v229_v3  ;;  %v88_v20 = vand.u32 2147483648, %v229_v3  ;;  %vm243_vm4 = vcmp.eq.f32.partialorder %v71_v8, 8.507059e+37 }
   0xc   :  { %v155_v21 = vpop.eup %154  ;;  %v39_v22 = vmul.f32 %v35_v13, %v23_v0  ;;  %v107_v23 = vmul.f32 -28.0, %v35_v13  ;;  %v30_v25 = vmul.f32 %v234_v12, %v234_v12  ;;  %160 = vrcp.f32 %v234_v12 }
   0xd   :  { %v157_v26 = vpop.eup %156  ;;  %v48_v27 = vmul.f32 %v155_v21, %v23_v0  ;;  %vm53_vm5 = vweird.f32 %v155_v21  ;;  %v40_v28 = vmul.f32 %v36_v17, %v24_v1  ;;  %v108_v29 = vmul.f32 -28.0, %v36_v17 }
   0xe   :  { %v43_v30 = vmul.f32 %v39_v22, %v23_v0  ;;  %v115_v31 = vmul.f32 48.0, %v39_v22  ;;  %v63_v32 = vmul.f32 %v157_v26, %v24_v1  ;;  %vm68_vm6 = vweird.f32 %v157_v26  ;;  %vm259_vm9 = vmor %vm52_vm0, %vm53_vm5 }
   0xf   :  { %v159_v33 = vpop.eup %158  ;;  %v49_v34 = vsub.f32 1.0, %v48_v27  ;;  %v44_v35 = vmul.f32 %v40_v28, %v24_v1  ;;  %v116_v36 = vmul.f32 48.0, %v40_v28  ;;  %v37_v37 = vmul.f32 %v33_v18, %v229_v3  ;;  %vm265_vm10 = vmor %vm67_vm1, %vm68_vm6 }
  0x10   :  { %v123_v38 = vmul.f32 -21.0, %v43_v30  ;;  %v64_v39 = vsub.f32 1.0, %v63_v32  ;;  %v78_v40 = vmul.f32 %v159_v33, %v229_v3  ;;  %vm83_vm7 = vweird.f32 %v159_v33 }
  0x11   :  { %v50_v41 = vmul.f32 %v155_v21, %v49_v34  ;;  %v124_v42 = vmul.f32 -21.0, %v44_v35  ;;  %v41_v43 = vmul.f32 %v37_v37, %v229_v3  ;;  %vm253_vm8 = vcmp.eq.f32.partialorder %v86_v19, 8.507059e+37  ;;  %vm277_vm12 = vmor %vm82_vm2, %vm83_vm7 }
  0x12   :  { %v161_v45 = vpop.eup %160  ;;  %v65_v47 = vmul.f32 %v157_v26, %v64_v39  ;;  %v79_v48 = vsub.f32 1.0, %v78_v40  ;;  %v89_v49 = vor.u32 1.1754944e-38, %v88_v20  ;;  %v109_v50 = vmul.f32 -28.0, %v37_v37 }
  0x13   :  { %v51_v51 = vadd.f32 %v155_v21, %v50_v41  ;;  %v45_v53 = vmul.f32 %v41_v43, %v229_v3  ;;  %v117_v54 = vmul.f32 48.0, %v41_v43  ;;  %v34_v55 = vmul.f32 %v30_v25, %v30_v25 }
  0x14   :  { %v66_v56 = vadd.f32 %v157_v26, %v65_v47  ;;  %v80_v57 = vmul.f32 %v159_v33, %v79_v48  ;;  %v93_v58 = vmul.f32 %v161_v45, %v234_v12  ;;  %vm97_vm11 = vweird.f32 %v234_v12 }
  0x15   :  { %v55_v59 = vsel %vm259_vm9, %v155_v21, %v51_v51  ;;  %v125_v61 = vmul.f32 -21.0, %v45_v53  ;;  %v38_v62 = vmul.f32 %v34_v55, %v234_v12  ;;  %vm98_vm13 = vweird.f32 %v161_v45 }
  0x16   :  { %v60_v63 = vsel %vm237_vm3, %v59_v14, %v55_v59  ;;  %v70_v0 = vsel %vm265_vm10, %v157_v26, %v66_v56  ;;  %v81_v1 = vadd.f32 %v159_v33, %v80_v57  ;;  %v94_v2 = vsub.f32 1.0, %v93_v58  ;;  %vm99_vm14 = vmor %vm97_vm11, %vm98_vm13 }
  0x17   :  { %v111_v4 = vadd.f32 %v107_v23, %v60_v63  ;;  %v75_v3 = vsel %vm243_vm4, %v74_v15, %v70_v0  ;;  %v42_v5 = vmul.f32 %v38_v62, %v234_v12  ;;  %v101_v6 = vand.u32 2147483647, %v234_v12 }
  0x18   :  { %v112_v7 = vadd.f32 %v108_v29, %v75_v3  ;;  %v85_v8 = vsel %vm277_vm12, %v159_v33, %v81_v1  ;;  %v95_v9 = vmul.f32 %v161_v45, %v94_v2  ;;  %v103_v10 = vand.u32 2147483648, %v234_v12 }
  0x19   :  { %v119_v11 = vadd.f32 %v115_v31, %v111_v4  ;;  %v90_v13 = vsel %vm253_vm8, %v89_v49, %v85_v8  ;;  %v46_v14 = vmul.f32 %v42_v5, %v234_v12  ;;  %vm102_vm15 = vcmp.eq.f32.partialorder %v101_v6, 8.507059e+37 }
  0x1a   :  { %v120_v15 = vadd.f32 %v116_v36, %v112_v7  ;;  %v113_v16 = vadd.f32 %v109_v50, %v90_v13  ;;  %v96_v17 = vadd.f32 %v161_v45, %v95_v9  ;;  %v104_v18 = vor.u32 1.1754944e-38, %v103_v10 }
  0x1b   :  { %v127_v19 = vadd.f32 %v123_v38, %v119_v11  ;;  %v110_v20 = vmul.f32 -28.0, %v38_v62  ;;  %v118_v24 = vmul.f32 48.0, %v42_v5  ;;  %v126_v28 = vmul.f32 -21.0, %v46_v14 }
  0x1c   :  { %v128_v21 = vadd.f32 %v124_v42, %v120_v15  ;;  %v121_v22 = vadd.f32 %v117_v54, %v113_v16  ;;  %v100_v23 = vsel %vm99_vm14, %v161_v45, %v96_v17 }
  0x1d   :  { %131 = vst [vmem:[#allocation5] sm:$0xff] %v127_v19  ;;  %v105_v25 = vsel %vm102_vm15, %v104_v18, %v100_v23 }
  0x1e   :  { %132 = vst [vmem:[#allocation5 + $0x8] sm:$0xff] %v128_v21  ;;  %v129_v26 = vadd.f32 %v125_v61, %v121_v22  ;;  %v114_v27 = vadd.f32 %v110_v20, %v105_v25 }
  0x20   :  { %133 = vst [vmem:[#allocation5 + $0x10] sm:$0xff] %v129_v26  ;;  %v122_v12 = vadd.f32 %v118_v24, %v114_v27 }
  0x22   :  { %v130_v29 = vadd.f32 %v126_v28, %v122_v12 }
  0x24   :  { %134 = vst [vmem:[#allocation5 + $0x18] sm:$0xff] %v130_v29 }
  0x25   :  { %145 = dma.vmem_to_hbm [thread:$0]  %s141_s11, 512, %s143_s14, [#allocation4]  }
  0x26   :  { %212 = dma.done.wait [#allocation4], 512  }
  0x27   :  { %213 = vsyncadd [#allocation4], 4294966784 }
  0x28   :  { %150 = vsyncpa [#allocation3], 1 }
  0x29   :  { %151 = vsyncpa [#allocation4], 1 }

</bundles_post_ra>
